<compile_context>
chip_gen: v5e
topology: v5e:2x2
jax: 0.10.0
libtpu: 0.0.40
codegen_flags: <defaults>
</compile_context>

<pallas_src>
import jax
import jax.numpy as jnp
from jax.experimental import pallas as pl
from jax.experimental.pallas import tpu as pltpu


def _round_up(x, m):
    return (x + m - 1) // m * m


# ----------------------------------------------------------------------------
# Kernels (whole per-batch matrices resident in VMEM)
# ----------------------------------------------------------------------------
def _einsum3_left_kernel(x1_ref, x2_ref, x3_ref, o_ref):
    # (x1 @ x2) @ x3, f32 accumulation; intermediate downcast to the promoted
    # input dtype so low-precision inputs keep the native MXU path.
    a = x1_ref[...]          # (Bt, I, J)
    b = x2_ref[...]          # (Bt, J, K)
    c = x3_ref[...]          # (Bt, K, L)
    cdt = jnp.result_type(x1_ref.dtype, x2_ref.dtype, x3_ref.dtype)
    t = jnp.einsum("bij,bjk->bik", a, b, preferred_element_type=jnp.float32)
    t = t.astype(cdt)
    out = jnp.einsum("bik,bkl->bil", t, c, preferred_element_type=jnp.float32)
    o_ref[...] = out.astype(o_ref.dtype)


def _einsum3_right_kernel(x1_ref, x2_ref, x3_ref, o_ref):
    # x1 @ (x2 @ x3), f32 accumulation; same dtype policy as the left kernel.
    a = x1_ref[...]          # (Bt, I, J)
    b = x2_ref[...]          # (Bt, J, K)
    c = x3_ref[...]          # (Bt, K, L)
    cdt = jnp.result_type(x1_ref.dtype, x2_ref.dtype, x3_ref.dtype)
    t = jnp.einsum("bjk,bkl->bjl", b, c, preferred_element_type=jnp.float32)
    t = t.astype(cdt)
    out = jnp.einsum("bij,bjl->bil", a, t, preferred_element_type=jnp.float32)
    o_ref[...] = out.astype(o_ref.dtype)


# ----------------------------------------------------------------------------
# Large-shape fallback kernel: tiles over (batch, I, L, K), K-reduction with a
# resident f32 VMEM accumulator (left association: (x1@x2)@x3).
# ----------------------------------------------------------------------------
def _einsum3_left_tiled_kernel(x1_ref, x2_ref, x3_ref, o_ref, acc_ref):
    @pl.when(pl.program_id(3) == 0)
    def _init():
        acc_ref[...] = jnp.zeros_like(acc_ref)

    a = x1_ref[...]          # (1, ti, J)
    b = x2_ref[...]          # (1, J, tk)
    c = x3_ref[...]          # (1, tk, tl)
    cdt = jnp.result_type(x1_ref.dtype, x2_ref.dtype, x3_ref.dtype)
    t = jnp.einsum("bij,bjk->bik", a, b, preferred_element_type=jnp.float32)
    t = t.astype(cdt)
    acc_ref[...] += jnp.einsum("bik,bkl->bil", t, c,
                               preferred_element_type=jnp.float32)

    @pl.when(pl.program_id(3) == pl.num_programs(3) - 1)
    def _store():
        o_ref[...] = acc_ref[...].astype(o_ref.dtype)


def _vmem_capacity_bytes():
    # Generation-aware VMEM capacity (v7x: 64 MiB, v5e/v6e: 128 MiB). Fall back
    # to the smallest (v7x) value if the query is unavailable.
    try:
        cap = int(pltpu.get_tpu_info().vmem_capacity_bytes)
        if cap > 0:
            return cap
    except Exception:
        pass
    return 64 * 1024 * 1024


def _einsum3_tiled(x1p, x2p, x3p, I, L, out_dtype, vmem_budget, vmem_limit):
    """Fallback path for shapes where a single batch overflows the VMEM budget."""
    B, _, Jp = x1p.shape
    _, _, Kp = x2p.shape
    _, _, Lp = x3p.shape
    in_it = max(jnp.dtype(x1p.dtype).itemsize,
                jnp.dtype(x2p.dtype).itemsize,
                jnp.dtype(x3p.dtype).itemsize)
    out_it = jnp.dtype(out_dtype).itemsize

    # Row (I) tiling for this path only: pad to a clean tile multiple.
    if I <= 512:
        Ip = _round_up(I, 8)
        ti = Ip
    else:
        Ip = _round_up(I, 256)
        ti = 256
    if Ip != I:
        x1p = jnp.pad(x1p, ((0, 0), (0, Ip - I), (0, 0)))

    def step_bytes(ti_, tk_, tl_):
        return (2 * in_it * (ti_ * Jp + Jp * tk_ + tk_ * tl_)   # dbl-buffered in
                + 2 * out_it * ti_ * tl_                        # dbl-buffered out
                + 4 * ti_ * tk_ + in_it * ti_ * tk_             # f32 t + downcast
                + 4 * ti_ * tl_                                 # f32 partial prod
                + 4 * ti_ * tl_)                                # acc scratch

    cand = [512, 384, 256, 128]
    tk = next((c for c in cand if Kp % c == 0), 128)
    tl = next((c for c in cand if Lp % c == 0), 128)
    while step_bytes(ti, tk, tl) > vmem_budget and (tk > 128 or tl > 128):
        if tk >= tl and tk > 128:
            tk = next((c for c in cand if c < tk and Kp % c == 0), 128)
        elif tl > 128:
            tl = next((c for c in cand if c < tl and Lp % c == 0), 128)
        else:
            break

    grid = (B, Ip // ti, Lp // tl, Kp // tk)
    cost = pl.CostEstimate(
        flops=2 * B * (Ip * Jp * Kp + Ip * Kp * Lp),
        transcendentals=0,
        bytes_accessed=int(in_it * B * (Ip * Jp + Jp * Kp + Kp * Lp)
                           + out_it * B * Ip * Lp),
    )

    out_padded = pl.pallas_call(
        _einsum3_left_tiled_kernel,
        out_shape=jax.ShapeDtypeStruct((B, Ip, Lp), out_dtype),
        grid_spec=pltpu.PrefetchScalarGridSpec(
            num_scalar_prefetch=0,
            grid=grid,
            in_specs=[
                pl.BlockSpec((1, ti, Jp), lambda b, i, l, k: (b, i, 0)),
                pl.BlockSpec((1, Jp, tk), lambda b, i, l, k: (b, 0, k)),
                pl.BlockSpec((1, tk, tl), lambda b, i, l, k: (b, k, l)),
            ],
            out_specs=pl.BlockSpec((1, ti, tl), lambda b, i, l, k: (b, i, l)),
            scratch_shapes=[pltpu.VMEM((1, ti, tl), jnp.float32)],
        ),
        compiler_params=pltpu.CompilerParams(
            dimension_semantics=("parallel", "parallel", "parallel", "arbitrary"),
            vmem_limit_bytes=vmem_limit,
            allow_input_fusion=[True, True, True],
        ),
        cost_estimate=cost,
    )(x1p, x2p, x3p)

    if Ip == I and Lp == L:
        return out_padded
    return out_padded[:, :I, :L]


# ----------------------------------------------------------------------------
# Wrapper
# ----------------------------------------------------------------------------
def einsum_model_pallas(x1, x2, x3, equation="bij,bjk,bkl->bil"):
    """Computes einsum('bij,bjk,bkl->bil', x1, x2, x3) with a Pallas TPU kernel."""
    assert equation.replace(" ", "") == "bij,bjk,bkl->bil"
    B, I, J = x1.shape
    Bb, Jb, K = x2.shape
    Bc, Kc, L = x3.shape
    assert B == Bb == Bc and J == Jb and K == Kc

    out_dtype = jnp.result_type(x1.dtype, x2.dtype, x3.dtype)
    out_itemsize = jnp.dtype(out_dtype).itemsize
    comp_itemsize = out_itemsize  # promoted compute dtype == promoted out dtype

    # --- pad lane dims (J, K, L) to multiples of 128 (zeros are inert for the
    #     contraction); I (sublane) is deliberately left unpadded.
    LANE = 128
    Jp = _round_up(J, LANE)
    Kp = _round_up(K, LANE)
    Lp = _round_up(L, LANE)

    def pad_last2(x, d1, d2):
        s = x.shape
        if s[1] == d1 and s[2] == d2:
            return x
        return jnp.pad(x, ((0, 0), (0, d1 - s[1]), (0, d2 - s[2])))

    x1p = pad_last2(x1, I, Jp)
    x2p = pad_last2(x2, Jp, Kp)
    x3p = pad_last2(x3, Kp, Lp)

    # --- association order: compare MXU-occupancy-rounded costs (N/contraction
    #     dims rounded to the 256-wide MXU; rows rounded to the sublane).
    MXU = 256

    def rN(x):
        return _round_up(x, MXU)

    ri = _round_up(I, 8)
    rj_rows = _round_up(Jp, 8)
    left_cost = ri * rN(Jp) * rN(Kp) + ri * rN(Kp) * rN(Lp)     # (x1@x2)@x3
    right_cost = rj_rows * rN(Kp) * rN(Lp) + ri * rN(Jp) * rN(Lp)  # x1@(x2@x3)
    use_left = left_cost <= right_cost
    kernel = _einsum3_left_kernel if use_left else _einsum3_right_kernel
    flops_per_batch = 2 * (I * Jp * Kp + I * Kp * Lp if use_left
                           else Jp * Kp * Lp + I * Jp * Lp)

    # --- generation-aware VMEM budget / limit
    vmem_capacity = _vmem_capacity_bytes()
    vmem_budget = int(0.45 * vmem_capacity)
    vmem_limit = min(int(0.75 * vmem_capacity), 112 * 1024 * 1024)

    # --- per-batch VMEM footprint, including the f32 intermediate, its
    #     downcast copy and the pre-cast f32 output.
    in_bytes = (jnp.dtype(x1.dtype).itemsize * I * Jp
                + jnp.dtype(x2.dtype).itemsize * Jp * Kp
                + jnp.dtype(x3.dtype).itemsize * Kp * Lp)
    out_bytes = out_itemsize * I * Lp
    t_elems = I * Kp if use_left else Jp * Lp
    interm_bytes = 4 * t_elems + comp_itemsize * t_elems + 4 * I * Lp
    per_batch_total = 2 * in_bytes + 2 * out_bytes + interm_bytes

    fitting = [d for d in range(1, B + 1)
               if B % d == 0 and d * per_batch_total <= vmem_budget]
    if not fitting:
        # Even a single batch overflows the budget -> tiled K-reduction path.
        return _einsum3_tiled(x1p, x2p, x3p, I, L, out_dtype,
                              vmem_budget, vmem_limit)

    def pick(ds):
        return max(ds) if ds else None

    bt = (pick([d for d in fitting if B // d >= 4 and (B // d) % 2 == 0])
          or pick([d for d in fitting if B // d >= 4])
          or pick([d for d in fitting if B // d >= 2])
          or max(fitting))
    grid_b = B // bt

    cost = pl.CostEstimate(
        flops=B * flops_per_batch,
        transcendentals=0,
        bytes_accessed=int(B * (in_bytes + out_bytes)),
    )

    out_padded = pl.pallas_call(
        kernel,
        out_shape=jax.ShapeDtypeStruct((B, I, Lp), out_dtype),
        grid_spec=pltpu.PrefetchScalarGridSpec(
            num_scalar_prefetch=0,
            grid=(grid_b,),
            in_specs=[
                pl.BlockSpec((bt, I, Jp), lambda b: (b, 0, 0)),
                pl.BlockSpec((bt, Jp, Kp), lambda b: (b, 0, 0)),
                pl.BlockSpec((bt, Kp, Lp), lambda b: (b, 0, 0)),
            ],
            out_specs=pl.BlockSpec((bt, I, Lp), lambda b: (b, 0, 0)),
        ),
        compiler_params=pltpu.CompilerParams(
            dimension_semantics=("parallel",),
            vmem_limit_bytes=vmem_limit,
            allow_input_fusion=[True, True, True],
        ),
        cost_estimate=cost,
    )(x1p, x2p, x3p)

    if Lp == L:
        return out_padded
    return out_padded[:, :, :L]


if __name__ == "__main__":
    key = jax.random.PRNGKey(0)
    k1, k2, k3 = jax.random.split(key, 3)

    # Small shapes consistent with "bij,bjk,bkl->bil"
    B, I, J, K, L = 2, 16, 32, 32, 64
    x1 = jax.random.normal(k1, (B, I, J), dtype=jnp.float32)
    x2 = jax.random.normal(k2, (B, J, K), dtype=jnp.float32)
    x3 = jax.random.normal(k3, (B, K, L), dtype=jnp.float32)

    y = einsum_model_pallas(x1, x2, x3)
    jax.block_until_ready(y)

    # Reference check (same semantics as torch.einsum("bij,bjk,bkl->bil", ...))
    y_ref = jnp.einsum("bij,bjk,bkl->bil", x1, x2, x3)
    assert y.shape == y_ref.shape == (B, I, L)
    assert jnp.allclose(y, y_ref, atol=1e-3, rtol=1e-3)

    print("KERNEL_OK")
</pallas_src>

<mosaic_0001>
module attributes {stable_mosaic.version = 11 : i64} {
  func.func @_einsum3_left_kernel(%arg0: i32, %arg1: memref<1x16x128xf32, #tpu.memory_space<vmem>>, %arg2: memref<1x128x128xf32, #tpu.memory_space<vmem>>, %arg3: memref<1x128x128xf32, #tpu.memory_space<vmem>>, %arg4: memref<1x16x128xf32, #tpu.memory_space<vmem>>) attributes {dimension_semantics = [#tpu.dimension_semantics<parallel>], iteration_bounds = array<i64: 2>, scalar_prefetch = 0 : i64, scratch_operands = 0 : i64, tpu.core_type = #tpu.core_type<tc>, window_params = [{transform_indices = @transform_0, window_bounds = array<i64: 1, 16, 128>}, {transform_indices = @transform_1, window_bounds = array<i64: 1, 128, 128>}, {transform_indices = @transform_2, window_bounds = array<i64: 1, 128, 128>}, {transform_indices = @transform_3, window_bounds = array<i64: 1, 16, 128>}]} {
    %c0 = arith.constant 0 : index
    %c0_0 = arith.constant 0 : index
    %c0_1 = arith.constant 0 : index
    %0 = vector.load %arg1[%c0, %c0_0, %c0_1] : memref<1x16x128xf32, #tpu.memory_space<vmem>>, vector<1x16x128xf32>
    %c0_2 = arith.constant 0 : index
    %c0_3 = arith.constant 0 : index
    %c0_4 = arith.constant 0 : index
    %1 = vector.load %arg2[%c0_2, %c0_3, %c0_4] : memref<1x128x128xf32, #tpu.memory_space<vmem>>, vector<1x128x128xf32>
    %c0_5 = arith.constant 0 : index
    %c0_6 = arith.constant 0 : index
    %c0_7 = arith.constant 0 : index
    %2 = vector.load %arg3[%c0_5, %c0_6, %c0_7] : memref<1x128x128xf32, #tpu.memory_space<vmem>>, vector<1x128x128xf32>
    "tpu.trace_start"() <{level = 10 : i32, message = "bij,bjk->bik"}> : () -> ()
    %cst = arith.constant dense<0.000000e+00> : vector<1x16x128xf32>
    %3 = tpu.matmul %0, %1, %cst {dimension_numbers = #tpu.dot_dimension_numbers<[2], [1], [1], [2], [0, 0, 0, 1, 1, 2], [0], [0]>} : vector<1x16x128xf32>, vector<1x128x128xf32>, vector<1x16x128xf32> -> vector<1x16x128xf32>
    "tpu.trace_stop"() : () -> ()
    "tpu.trace_start"() <{level = 10 : i32, message = "bik,bkl->bil"}> : () -> ()
    %cst_8 = arith.constant dense<0.000000e+00> : vector<1x16x128xf32>
    %4 = tpu.matmul %3, %2, %cst_8 {dimension_numbers = #tpu.dot_dimension_numbers<[2], [1], [1], [2], [0, 0, 0, 1, 1, 2], [0], [0]>} : vector<1x16x128xf32>, vector<1x128x128xf32>, vector<1x16x128xf32> -> vector<1x16x128xf32>
    "tpu.trace_stop"() : () -> ()
    %c0_9 = arith.constant 0 : index
    %c0_10 = arith.constant 0 : index
    %c0_11 = arith.constant 0 : index
    %5 = vector.load %arg4[%c0_9, %c0_10, %c0_11] : memref<1x16x128xf32, #tpu.memory_space<vmem>>, vector<1x16x128xf32>
    tpu.vector_store %arg4[%c0_9, %c0_10, %c0_11], %4 {strides = array<i32>} : memref<1x16x128xf32, #tpu.memory_space<vmem>>, vector<1x16x128xf32>,
    return
  }
  func.func @transform_0(%arg0: i32) -> (i32, i32, i32) {
    %c0_i32 = arith.constant 0 : i32
    %c0_i32_0 = arith.constant 0 : i32
    %c0_i32_1 = arith.constant 0 : i32
    return %arg0, %c0_i32, %c0_i32_0 : i32, i32, i32
  }
  func.func @transform_1(%arg0: i32) -> (i32, i32, i32) {
    %c0_i32 = arith.constant 0 : i32
    %c0_i32_0 = arith.constant 0 : i32
    %c0_i32_1 = arith.constant 0 : i32
    return %arg0, %c0_i32, %c0_i32_0 : i32, i32, i32
  }
  func.func @transform_2(%arg0: i32) -> (i32, i32, i32) {
    %c0_i32 = arith.constant 0 : i32
    %c0_i32_0 = arith.constant 0 : i32
    %c0_i32_1 = arith.constant 0 : i32
    return %arg0, %c0_i32, %c0_i32_0 : i32, i32, i32
  }
  func.func @transform_3(%arg0: i32) -> (i32, i32, i32) {
    %c0_i32 = arith.constant 0 : i32
    %c0_i32_0 = arith.constant 0 : i32
    %c0_i32_1 = arith.constant 0 : i32
    return %arg0, %c0_i32, %c0_i32_0 : i32, i32, i32
  }
}

</mosaic_0001>

<bundles_post_ra>
// kernel: tpu_custom_call.1
= control target key start
LH: loop header
LB: loop body
LE: loop exit
PB: predicated region body
PF: predicated region fallthrough
CT: control target
= control target key end

     0   :  { %s1025_s0 = inlined_call_operand.hbm [shape: f32[2,16,128], index: 0, kind: input, shape index: {}]   ;;  %s1026_s1 = inlined_call_operand.hbm [shape: f32[2,128,128], index: 1, kind: input, shape index: {}]   ;;  %s1027_s2 = inlined_call_operand.hbm [shape: f32[2,128,128], index: 2, kind: input, shape index: {}]   ;;  %s1028_s3 = inlined_call_operand.hbm [shape: f32[2,16,128], index: 3, kind: output, shape index: {}]  }
   0x1   :  { %1034 = sst [smem:[#allocation14_spill]] %s1026_s1 }
   0x2   :  { %8 = vsyncpa [#allocation3], 0 }
   0x3   :  { %10 = vsyncpa [#allocation3 + $0x1], 0 }
   0x4   :  { %11 = vsyncpa [#allocation6], 0 }
   0x5   :  { %13 = vsyncpa [#allocation6 + $0x1], 0 }
   0x6   :  { %14 = vsyncpa [#allocation4], 0 }
   0x7   :  { %16 = vsyncpa [#allocation4 + $0x1], 0  ;;  %s790_s12 = smov 0   ;;  %s792_s13 = smov 0  }
   0x8   :  { %s794_s14 = smov 0   ;;  %s796_s15 = smov 0  }
   0x9 LB: > { %1035 = sst [smem:[#allocation12_spill]] %s760_s14  ;;  %s811_s16 = sadd.s32 4294967295, %s764_s15   ;;  %s764_s15 = sphi %s796_s15, %s1050_s15   ;;  %s760_s14 = sphi %s794_s14, %s1047_s14   ;;  %s756_s13 = sphi %s792_s13, %s1049_s13   ;;  %s752_s12 = sphi %s790_s12, %s1048_s12  }
   0xa   : > { %s486_s17 = sadd.s32 4294967294, %s764_s15   ;;  %s815_s18 = sadd.s32 1, %s764_s15  }
   0xb   : > { %s29_s19 = sadd.s32 1, %s760_s14  ;;  %s26_s20 = ssub.s32 %s764_s15, %s815_s18 }
   0xc   : > { %p36_p0 = scmp.ne.s32.totalorder %s760_s14, %s756_s13  ;;  %p27_p1 = scmp.eq.s32.totalorder %s26_s20, 0 }
   0xd   : > { %p37_p2 = scmp.eq.s32.totalorder %s764_s15, 0  ;;  %p42_p3 = scmp.ne.s32.totalorder %s756_s13, %s752_s12 }
   0xe   : > { %p43_p4 = scmp.eq.s32.totalorder %s811_s16, 0  ;;  %p118_p7 = scmp.eq.s32.totalorder %s811_s16, 1 }
   0xf   : > { %s827_s21 = scalar_select %p27_p1, %s760_s14, %s29_s19  }
  0x10   : > { %p38_p5 = por %p37_p2, %p36_p0  ;;  %p829_p6 = por %p43_p4, %p42_p3 }
  0x11   : > { %1036 = sst [smem:[#allocation13_spill]] %s827_s21  ;;  %p124_p8 = scmp.eq.s32.totalorder %s486_s17, 1 }
  0x12   : > { %p566_p10 = scmp.lt.s32.totalorder %s764_s15, 2  ;;  %p836_p11 = por %p118_p7, %p36_p0 }
  0x13   : > { %p840_p12 = por %p124_p8, %p42_p3  ;;  %s845_s25 = sand.u32 1, %s760_s14  }
  0x14   : > { %p847_p13 = pnand %p566_p10, %p38_p5  ;;  %s166_s27 = sand.u32 1, %s764_s15  }
  0x15   : > { %s492_s28 = sshll.u32 %s845_s25, 7  ;;  %s509_s29 = sshll.u32 %s764_s15, 7 }
  0x16   : > { %s1041_s1 = sld [smem:[#allocation14_spill]]  ;;  %s170_s6 = scalar_lea.vmem [#allocation5], %s492_s28 }
  0x17   : > { %s178_s7 = sshll.u32 %s170_s6, 4  ;;  %s859_s9 = scalar_lea.sflag [#allocation6], %s166_s27  ;;  %s179_s7 = int_to_ptr.vmem [resolvable:$true] %s178_s7 }
  0x18   : > { %p608_p1 = pneg %p847_p13 }
  0x1c   : > { %s175_s5 = scalar_lea.hbm %s1041_s1, %s509_s29  ;;  %s611_s20 = scalar_lea.hbm %s1041_s1, 256 }
  0x1d   : > { %s176_s8 = sshll.u32 %s175_s5, 4  ;;  %s177_s8 = int_to_ptr.hbm [resolvable:$true] %s176_s8 }
  0x1e   : > { %s604_s10 = sshra.s32 %s177_s8, 4  ;;  %s605_s10 = int_to_ptr.hbm [resolvable:$true] %s604_s10 }
  0x1f   : > { %s606_s11 = scalar_lea.hbm %s605_s10, 128  ;;  %p612_p4 = scmp.lt.s32.totalorder %s605_s10, %s1041_s1 }
  0x20   : > { %p607_p0 = scmp.ne.s32.totalorder %s605_s10, %s606_s11  ;;  %p613_p5 = scmp.lt.s32.totalorder %s611_s20, %s606_s11 }
  0x22   : > { %p609_p2 = pnand %p608_p1, %p607_p0  ;;  %p614_p7 = por %p613_p5, %p612_p4 }
  0x24   : > { %p610_p3 = pneg %p609_p2 }
  0x26   : > { %p615_p8 = pnand %p614_p7, %p610_p3 }
  0x28   : > { %618 = shalt.err (!%p615_p8)
}
  0x29   : > { %s1029_s27 = smov 128   ;;  %s1031_s5 = smov 8  }
  0x2a   : > { %558 = dma.hbm_to_vmem [thread:$0]  (!%p847_p13), %s177_s8, 2048, %s179_s7, %s859_s9, %s1029_s27, %s1029_s27, %s1031_s5  }
  0x2b   : > { %s197_s11 = scalar_lea.hbm %s1027_s2, %s509_s29  ;;  %s192_s17 = scalar_lea.vmem [#allocation7], %s492_s28 }
  0x2c   : > { %s200_s19 = sshll.u32 %s192_s17, 4  ;;  %s198_s20 = sshll.u32 %s197_s11, 4  ;;  %s883_s19 = int_to_ptr.vmem [resolvable:$true] %s200_s19  ;;  %s885_s20 = int_to_ptr.hbm [resolvable:$true] %s198_s20 }
  0x2d   : > { %p498_p10 = scmp.ge.s32.totalorder %s764_s15, 1  ;;  %p208_p0 = scmp.lt.s32.totalorder %s764_s15, 3 }
  0x2e   : > { %s489_s30 = sshll.u32 %s845_s25, 4  ;;  %s508_s4 = sshll.u32 %s764_s15, 4 }
  0x2f   : > { %p891_p2 = pnand %p498_p10, %p208_p0  ;;  %s153_s28 = scalar_lea.hbm %s1025_s0, %s508_s4 }
  0x30   : > { %s148_s6 = scalar_lea.vmem [#allocation2], %s489_s30  ;;  %s154_s11 = sshll.u32 %s153_s28, 4  ;;  %s155_s11 = int_to_ptr.hbm [resolvable:$true] %s154_s11 }
  0x31   : > { %s156_s10 = sshll.u32 %s148_s6, 4  ;;  %s145_s17 = scalar_lea.sflag [#allocation3], %s845_s25  ;;  %s157_s10 = int_to_ptr.vmem [resolvable:$true] %s156_s10 }
  0x32   : > { %s634_s27 = sshra.s32 %s155_s11, 4  ;;  %s641_s14 = scalar_lea.hbm %s1025_s0, 32  ;;  %s635_s27 = int_to_ptr.hbm [resolvable:$true] %s634_s27 }
  0x33   : > { %s636_s5 = scalar_lea.hbm %s635_s27, 16  ;;  %p642_p7 = scmp.lt.s32.totalorder %s635_s27, %s1025_s0 }
  0x34   : > { %p637_p3 = scmp.ne.s32.totalorder %s635_s27, %s636_s5  ;;  %p643_p8 = scmp.lt.s32.totalorder %s641_s14, %s636_s5 }
  0x36   : > { %p639_p4 = pnand %p637_p3, %p608_p1  ;;  %p644_p10 = por %p643_p8, %p642_p7 }
  0x38   : > { %p640_p5 = pneg %p639_p4 }
  0x3a   : > { %p645_p0 = pnand %p644_p10, %p640_p5 }
  0x3c   : > { %648 = shalt.err (!%p645_p0)
}
  0x3d   : > { %s1043_s25 = smov 8   ;;  %s1044_s30 = smov 128  }
  0x3e   : > { %555 = dma.hbm_to_vmem [thread:$0]  (!%p847_p13), %s155_s11, 256, %s157_s10, %s145_s17, %s1044_s30, %s1044_s30, %s1043_s25  }
  0x3f   : > { %s664_s29 = sshra.s32 %s885_s20, 4  ;;  %s671_s27 = scalar_lea.hbm %s1027_s2, 256  ;;  %s665_s29 = int_to_ptr.hbm [resolvable:$true] %s664_s29 }
  0x40   : > { %s666_s1 = scalar_lea.hbm %s665_s29, 128  ;;  %p672_p5 = scmp.lt.s32.totalorder %s665_s29, %s1027_s2 }
  0x41   : > { %p667_p3 = scmp.ne.s32.totalorder %s665_s29, %s666_s1  ;;  %p673_p7 = scmp.lt.s32.totalorder %s671_s27, %s666_s1 }
  0x43   : > { %p669_p4 = pnand %p667_p3, %p608_p1  ;;  %p674_p8 = por %p673_p7, %p672_p5 }
  0x45   : > { %p670_p9 = pneg %p669_p4 }
  0x47   : > { %p675_p10 = pnand %p674_p8, %p670_p9 }
  0x49   : > { %678 = shalt.err (!%p675_p10)
}
  0x4a   : > { %561 = dma.hbm_to_vmem [thread:$0]  (!%p847_p13), %s885_s20, 2048, %s883_s19, %s859_s9, %s1044_s30, %s1044_s30, %s1043_s25  }
  0x4b   : > { %212 = sbr.rel (%p891_p2) target bundleno = 384 (0x180), region = 32  ;;  %s934_s6 = sand.u32 (!%p891_p2), 1, %s756_s13  }
  0x4c   : > { %s499_s10 = sshll.u32 (!%p891_p2), %s934_s6, 4  ;;  %s215_s11 = scalar_lea.sflag (!%p891_p2), [#allocation3], %s934_s6 }
  0x4d   : > { %s940_s26 = scalar_lea.vmem (!%p891_p2), [#allocation2], %s499_s10 }
  0x50   : > { %739 = dma.done.wait (%p829_p6), %s215_s11, 256  }
  0x51   : > { %741 = vsyncadd (%p829_p6), %s215_s11, 4294967040  ;;  %s224_s9 = sand.u32 1, %s811_s16   ;;  %s500_s19 = sshll.u32 %s934_s6, 7 }
  0x52   : > { %s225_s20 = scalar_lea.sflag [#allocation6], %s224_s9  ;;  %s948_s7 = scalar_lea.vmem [#allocation5], %s500_s19 }
  0x53   : > { %743 = dma.done.wait (%p829_p6), %s225_s20, 4096  }
  0x54   : > { %745 = vsyncadd (%p829_p6), %s225_s20, 4294963200  ;;  %v289_v0 = vld [vmem:[%s948_s7 + $0x78] sm:$0xff]  ;;  %v288_v1 = vld [vmem:[%s948_s7 + $0x70] sm:$0xff]  ;;  %s959_s22 = scalar_lea.vmem [#allocation7], %s500_s19  ;;  %s271_s17 = scalar_lea.vmem [#allocation8], %s499_s10 }
  0x55   : > { %512 = vmatpush.msra.mxu2 %v289_v0  ;;  %306 = vmatpush.msra.mxu0 %v289_v0  ;;  %v287_v2 = vld [vmem:[%s948_s7 + $0x68] sm:$0xff]  ;;  %v286_v3 = vld [vmem:[%s948_s7 + $0x60] sm:$0xff]  ;;  %v285_v4 = vld [vmem:[%s948_s7 + $0x58] sm:$0xff]  ;;  %s511_s8 = sshll.u32 %s811_s16, 4  ;;  %s367_s29 = sshll.u32 %s271_s17, 4  ;;  %s368_s29 = int_to_ptr.vmem [resolvable:$true] %s367_s29 }
  0x56   : > { %v305_v5 = vld [vmem:[%s959_s22 + $0x78] sm:$0xff]  ;;  %v304_v6 = vld [vmem:[%s959_s22 + $0x70] sm:$0xff]  ;;  %v303_v8 = vld [vmem:[%s959_s22 + $0x68] sm:$0xff]  ;;  %s366_s30 = scalar_lea.hbm %s1028_s3, %s511_s8  ;;  %s355_s14 = scalar_lea.sflag [#allocation4], %s934_s6 }
  0x57   : > { %513 = vmatpush.msra.mxu2 %v288_v1  ;;  %307 = vmatpush.msra.mxu0 %v288_v1  ;;  %v284_v7 = vld [vmem:[%s948_s7 + $0x50] sm:$0xff]  ;;  %v283_v9 = vld [vmem:[%s948_s7 + $0x48] sm:$0xff]  ;;  %v302_v10 = vld [vmem:[%s959_s22 + $0x60] sm:$0xff]  ;;  %s369_s1 = sshll.u32 %s366_s30, 4  ;;  %s714_s28 = scalar_lea.hbm %s1028_s3, 32  ;;  %s370_s1 = int_to_ptr.hbm [resolvable:$true] %s369_s1 }
  0x58   : > { %528 = vmatpush.msra.mxu3 %v305_v5  ;;  %329 = vmatpush.msra.mxu1 %v305_v5  ;;  %v282_v11 = vld [vmem:[%s948_s7 + $0x40] sm:$0xff]  ;;  %v301_v12 = vld [vmem:[%s959_s22 + $0x58] sm:$0xff]  ;;  %v300_v14 = vld [vmem:[%s959_s22 + $0x50] sm:$0xff]  ;;  %s708_s21 = sshra.s32 %s370_s1, 4  ;;  %s709_s21 = int_to_ptr.hbm [resolvable:$true] %s708_s21 }
  0x59   : > { %514 = vmatpush.msra.mxu2 %v287_v2  ;;  %308 = vmatpush.msra.mxu0 %v287_v2  ;;  %v281_v13 = vld [vmem:[%s948_s7 + $0x38] sm:$0xff]  ;;  %v280_v15 = vld [vmem:[%s948_s7 + $0x30] sm:$0xff]  ;;  %v299_v16 = vld [vmem:[%s959_s22 + $0x48] sm:$0xff]  ;;  %s710_s27 = scalar_lea.hbm %s709_s21, 16  ;;  %p715_p1 = scmp.lt.s32.totalorder %s709_s21, %s1028_s3 }
  0x5a   : > { %529 = vmatpush.msra.mxu3 %v304_v6  ;;  %330 = vmatpush.msra.mxu1 %v304_v6  ;;  %v279_v17 = vld [vmem:[%s948_s7 + $0x28] sm:$0xff]  ;;  %v298_v18 = vld [vmem:[%s959_s22 + $0x40] sm:$0xff]  ;;  %v297_v20 = vld [vmem:[%s959_s22 + $0x38] sm:$0xff]  ;;  %p711_p6 = scmp.ne.s32.totalorder %s709_s21, %s710_s27  ;;  %p716_p2 = scmp.lt.s32.totalorder %s714_s28, %s710_s27 }
  0x5b   : > { %515 = vmatpush.msra.mxu2 %v286_v3  ;;  %309 = vmatpush.msra.mxu0 %v286_v3  ;;  %v278_v19 = vld [vmem:[%s948_s7 + $0x20] sm:$0xff]  ;;  %v277_v21 = vld [vmem:[%s948_s7 + $0x18] sm:$0xff]  ;;  %v296_v22 = vld [vmem:[%s959_s22 + $0x30] sm:$0xff] }
  0x5c   : > { %530 = vmatpush.msra.mxu3 %v303_v8  ;;  %331 = vmatpush.msra.mxu1 %v303_v8  ;;  %v276_v23 = vld [vmem:[%s948_s7 + $0x10] sm:$0xff]  ;;  %v295_v24 = vld [vmem:[%s959_s22 + $0x28] sm:$0xff]  ;;  %v294_v26 = vld [vmem:[%s959_s22 + $0x20] sm:$0xff]  ;;  %p712_p9 = pnand %p711_p6, %p836_p11  ;;  %p717_p0 = por %p716_p2, %p715_p1 }
  0x5d   : > { %516 = vmatpush.msra.mxu2 %v285_v4  ;;  %310 = vmatpush.msra.mxu0 %v285_v4  ;;  %v275_v25 = vld [vmem:[%s948_s7 + $0x8] sm:$0xff]  ;;  %v274_v27 = vld [vmem:[%s948_s7] sm:$0xff]  ;;  %v293_v30 = vld [vmem:[%s959_s22 + $0x18] sm:$0xff] }
  0x5e   : > { %531 = vmatpush.msra.mxu3 %v302_v10  ;;  %332 = vmatpush.msra.mxu1 %v302_v10  ;;  %v273_v28 = vld [vmem:[%s940_s26 + $0x8] sm:$0xff]  ;;  %v272_v29 = vld [vmem:[%s940_s26] sm:$0xff]  ;;  %p713_p13 = pneg %p712_p9 }
  0x5f   : > { %517 = vmatpush.msra.mxu2 %v284_v7  ;;  %311 = vmatpush.msra.mxu0 %v284_v7  ;;  %v292_v31 = vld [vmem:[%s959_s22 + $0x10] sm:$0xff]  ;;  %v291_v32 = vld [vmem:[%s959_s22 + $0x8] sm:$0xff]  ;;  %v290_v33 = vld [vmem:[%s959_s22] sm:$0xff] }
  0x60   : > { %532 = vmatpush.msra.mxu3 %v301_v12  ;;  %333 = vmatpush.msra.mxu1 %v301_v12  ;;  %p718_p3 = pnand %p717_p0, %p713_p13 }
  0x61   : > { %518 = vmatpush.msra.mxu2 %v283_v9  ;;  %312 = vmatpush.msra.mxu0 %v283_v9 }
  0x62   : > { %533 = vmatpush.msra.mxu3 %v300_v14  ;;  %334 = vmatpush.msra.mxu1 %v300_v14 }
  0x63   : > { %519 = vmatpush.msra.mxu2 %v282_v11  ;;  %313 = vmatpush.msra.mxu0 %v282_v11 }
  0x64   : > { %534 = vmatpush.msra.mxu3 %v299_v16  ;;  %335 = vmatpush.msra.mxu1 %v299_v16 }
  0x65   : > { %520 = vmatpush.msra.mxu2 %v281_v13  ;;  %314 = vmatpush.msra.mxu0 %v281_v13 }
  0x66   : > { %535 = vmatpush.msra.mxu3 %v298_v18  ;;  %336 = vmatpush.msra.mxu1 %v298_v18 }
  0x67   : > { %521 = vmatpush.msra.mxu2 %v280_v15  ;;  %315 = vmatpush.msra.mxu0 %v280_v15 }
  0x68   : > { %536 = vmatpush.msra.mxu3 %v297_v20  ;;  %337 = vmatpush.msra.mxu1 %v297_v20 }
  0x69   : > { %522 = vmatpush.msra.mxu2 %v279_v17  ;;  %316 = vmatpush.msra.mxu0 %v279_v17 }
  0x6a   : > { %537 = vmatpush.msra.mxu3 %v296_v22  ;;  %338 = vmatpush.msra.mxu1 %v296_v22 }
  0x6b   : > { %523 = vmatpush.msra.mxu2 %v278_v19  ;;  %317 = vmatpush.msra.mxu0 %v278_v19 }
  0x6c   : > { %538 = vmatpush.msra.mxu3 %v295_v24  ;;  %339 = vmatpush.msra.mxu1 %v295_v24 }
  0x6d   : > { %524 = vmatpush.msra.mxu2 %v277_v21  ;;  %318 = vmatpush.msra.mxu0 %v277_v21 }
  0x6e   : > { %539 = vmatpush.msra.mxu3 %v294_v26  ;;  %340 = vmatpush.msra.mxu1 %v294_v26 }
  0x6f   : > { %525 = vmatpush.msra.mxu2 %v276_v23  ;;  %319 = vmatpush.msra.mxu0 %v276_v23 }
  0x70   : > { %540 = vmatpush.msra.mxu3 %v293_v30  ;;  %341 = vmatpush.msra.mxu1 %v293_v30 }
  0x71   : > { %526 = vmatpush.msra.mxu2 %v275_v25  ;;  %320 = vmatpush.msra.mxu0 %v275_v25 }
  0x72   : > { %541 = vmatpush.msra.mxu3 %v292_v31  ;;  %342 = vmatpush.msra.mxu1 %v292_v31 }
  0x73   : > { %527 = vmatpush.msra.mxu2 %v274_v27  ;;  %321 = vmatpush.msra.mxu0 %v274_v27 }
  0x74   : > { %325 = vmatmul.f32.vlgmr.msra.gmra.mxu2 %v273_v28  ;;  %322 = vmatmul.f32.vlgmr.msra.gmra.mxu0 %v272_v29 }
  0x75   : > { %542 = vmatpush.msra.mxu3 %v291_v32  ;;  %343 = vmatpush.msra.mxu1 %v291_v32 }
  0x77   : > { %543 = vmatpush.msra.mxu3 %v290_v33  ;;  %344 = vmatpush.msra.mxu1 %v290_v33 }
  0xf1   : > { %v323_v34 = vpop.f32.mrf.mxu0 }
  0xf2   : > { %345 = vmatmul.f32.vlgmr.msra.gmra.mxu1 %v323_v34 }
  0xf7   : > { %v326_v35 = vpop.f32.mrf.mxu2 }
  0xf8   : > { %348 = vmatmul.f32.vlgmr.msra.gmra.mxu3 %v326_v35 }
 0x16f   : > { %v346_v36 = vpop.f32.mrf.mxu1 }
 0x170   : > { %352 = vst [vmem:[%s271_s17] sm:$0xff] %v346_v36 }
 0x17b   : > { %v349_v37 = vpop.f32.mrf.mxu3 }
 0x17c   : > { %353 = vst [vmem:[%s271_s17 + $0x8] sm:$0xff] %v349_v37 }
 0x17d   : > { %721 = shalt.err (!%p718_p3)
}
 0x17e   : > { %s768_s6 = smov 128   ;;  %s769_s26 = smov 8  }
 0x17f   : > { %550 = dma.vmem_to_hbm [thread:$0]  (%p836_p11), %s368_s29, 256, %s370_s1, %s355_s14, %s768_s6, %s768_s6, %s769_s26  }
 0x180 PF: > { %s384_s9 = sand.u32 1, %s752_s12   ;;  %p1045_p4 = scmp.ge.s32.totalorder %s764_s15, 2 }
 0x181   : > { %s385_s19 = scalar_lea.sflag [#allocation4], %s384_s9 }
 0x182   : > { %p563_p5 = pnand %p1045_p4, %p840_p12 }
 0x184   : > { %p564_p7 = pneg %p563_p5 }
 0x186   : > { %747 = dma.done.wait (%p564_p7), %s385_s19, 256  }
 0x187   : > { %749 = vsyncadd (%p564_p7), %s385_s19, 4294967040  ;;  %s1046_s20 = sld [smem:[#allocation12_spill]]  ;;  %p19_p8 = scmp.ge.s32.totalorder %s815_s18, 4  }
 0x188   : > { %s1047_s14 = sld [smem:[#allocation13_spill]]  ;;  %s1048_s12 = smov %s756_s13 }
 0x189   : > { %s1050_s15 = smov %s815_s18  ;;  %21 = sbr.rel (!%p19_p8) target bundleno = 9 (0x9), region = 101 }
 0x18d   : > { %s1049_s13 = smov %s1046_s20 }
 0x18e   :  { %391 = vsyncpa [#allocation3], 1 }
 0x18f   :  { %393 = vsyncpa [#allocation3 + $0x1], 1 }
 0x190   :  { %394 = vsyncpa [#allocation6], 1 }
 0x191   :  { %396 = vsyncpa [#allocation6 + $0x1], 1 }
 0x192   :  { %397 = vsyncpa [#allocation4], 1 }
 0x193   :  { %399 = vsyncpa [#allocation4 + $0x1], 1 }

</bundles_post_ra>
